<compile_context>
chip_gen: v7x
topology: tpu7x:2x2x1
jax: 0.10.0
libtpu: 0.0.40
codegen_flags: <defaults>
</compile_context>

<pallas_src>
import functools
import math

import jax
import jax.numpy as jnp
from jax.experimental import pallas as pl
from jax.experimental.pallas import tpu as pltpu


def _rup(n, m):
    return ((n + m - 1) // m) * m


# ----------------------------------------------------------------------------
# Pallas kernel 1: conv2d as 9 per-tap MXU matmuls over a halo-padded block
# ----------------------------------------------------------------------------
def _conv_tap_kernel(x_ref, w_ref, b_ref, o_ref, *, taps, th, leaky_slope):
    # x_ref : (1, NP, PH, PW, Cp)  bf16  spatially padded (phase-decomposed) input
    # w_ref : (T,  Cp, Op)         bf16  per-tap weight matrices (K,N padded to 128)
    # b_ref : (1,  Op)             f32   padded bias
    # o_ref : (1, th, OW, Op)      f32   output row tile (lane-dense, Op % 128 == 0)
    t = pl.program_id(1)
    ow, op_ = o_ref.shape[2], o_ref.shape[3]
    cp = x_ref.shape[-1]
    r0 = t * th
    acc = jnp.zeros((th * ow, op_), jnp.float32)
    for i, (ph, ro, co) in enumerate(taps):                 # unrolled, 9 taps
        xs = x_ref[0, ph, pl.ds(r0 + ro, th), pl.ds(co, ow), :]
        acc = acc + jnp.dot(xs.reshape(th * ow, cp), w_ref[i],
                            preferred_element_type=jnp.float32)
    acc = acc + b_ref[...]
    if leaky_slope is not None:
        acc = jnp.where(acc >= 0.0, acc, acc * leaky_slope)
    o_ref[...] = acc.reshape(1, th, ow, op_).astype(o_ref.dtype)


def _pick_row_tile(oh, ow):
    """Largest row tile (divisor of oh, multiple of 8 or full) with M~<=1024."""
    target = max(8, 1024 // max(ow, 1))
    if oh <= target:
        return oh
    cand = target - (target % 8)
    while cand >= 8:
        if oh % cand == 0:
            return cand
        cand -= 8
    return oh


def conv2d(x, layer, *, stride=1, padding=1, dilation=1, leaky_slope=0.1):
    """PyTorch-semantics Conv2d on NHWC activations; returns f32 NHWC."""
    B, H, W, C = x.shape
    assert C == layer["cin"], (C, layer["cin"])
    w, bias = layer["w"], layer["b"]
    T, Cp, Op = w.shape
    k = int(round(math.sqrt(T)))
    OH = (H + 2 * padding - dilation * (k - 1) - 1) // stride + 1
    OW = (W + 2 * padding - dilation * (k - 1) - 1) // stride + 1

    # bf16 cast + spatial zero-pad + channel zero-pad in one fused XLA op.
    xp = jnp.pad(x.astype(jnp.bfloat16),
                 ((0, 0), (padding, padding), (padding, padding), (0, Cp - C)))

    if stride == 1:
        x_ph = xp[:, None]                                   # (B, 1, PH, PW, Cp)
        taps = tuple((0, kh * dilation, kw * dilation)
                     for kh in range(k) for kw in range(k))
    else:
        # Phase-decompose so every tap becomes a stride-1 slice inside the
        # kernel (only used by the 2 stride-2 pyramid convs, tiny tensors).
        assert dilation == 1
        ph_h = -(-xp.shape[1] // stride)
        ph_w = -(-xp.shape[2] // stride)
        phases = []
        for a in range(stride):
            for c in range(stride):
                p = xp[:, a::stride, c::stride, :]
                p = jnp.pad(p, ((0, 0), (0, ph_h - p.shape[1]),
                                (0, ph_w - p.shape[2]), (0, 0)))
                phases.append(p)
        x_ph = jnp.stack(phases, axis=1)                     # (B, s*s, PHp, PWp, Cp)
        taps = tuple(((kh % stride) * stride + (kw % stride),
                      kh // stride, kw // stride)
                     for kh in range(k) for kw in range(k))

    NP, PH, PW = x_ph.shape[1], x_ph.shape[2], x_ph.shape[3]
    th = _pick_row_tile(OH, OW)
    grid = (B, OH // th)

    y = pl.pallas_call(
        functools.partial(_conv_tap_kernel, taps=taps, th=th,
                          leaky_slope=leaky_slope),
        out_shape=jax.ShapeDtypeStruct((B, OH, OW, Op), jnp.float32),
        grid=grid,
        in_specs=[
            # Padded input plane stays VMEM-resident across the row tiles.
            pl.BlockSpec((1, NP, PH, PW, Cp), lambda b, t: (b, 0, 0, 0, 0)),
            pl.BlockSpec((T, Cp, Op), lambda b, t: (0, 0, 0)),
            pl.BlockSpec((1, Op), lambda b, t: (0, 0)),
        ],
        out_specs=pl.BlockSpec((1, th, OW, Op), lambda b, t: (b, t, 0, 0)),
        compiler_params=pltpu.CompilerParams(
            dimension_semantics=("parallel", "parallel"),
            vmem_limit_bytes=32 * 1024 * 1024),
    )(x_ph, w, bias)
    return y[..., :layer["cout"]]


# ----------------------------------------------------------------------------
# Pallas kernel 2: cost volume (channel-mean over 25 displacements + leaky)
# ----------------------------------------------------------------------------
def _cost_volume_kernel(x1_ref, x2p_ref, o_ref, *, radius, th, c_true,
                        leaky_slope):
    # x1_ref : (1, th, W, C)        f32 row tile of frame-1 features
    # x2p_ref: (1, H+2r, W+2r, C)   f32 full padded warped frame-2 (resident)
    # o_ref  : (1, D, th, W)        f32 displacement-major (W on lanes)
    t = pl.program_id(1)
    w = x1_ref.shape[2]
    d = 2 * radius + 1
    x1 = x1_ref[0]
    r0 = t * th
    inv_c = jnp.float32(1.0 / c_true)
    outs = []
    for dy in range(d):
        for dx in range(d):
            x2s = x2p_ref[0, pl.ds(r0 + dy, th), pl.ds(dx, w), :]
            outs.append(jnp.sum(x1 * x2s, axis=-1) * inv_c)   # (th, W)
    cv = jnp.stack(outs, axis=0)                              # (D, th, W)
    if leaky_slope is not None:                               # fused corr act.
        cv = jnp.where(cv >= 0.0, cv, cv * leaky_slope)
    o_ref[...] = cv[None].astype(o_ref.dtype)


def cost_volume(x1, x2, radius, leaky_slope):
    B, H, W, C = x1.shape
    D = (2 * radius + 1) ** 2
    x2p = jnp.pad(x2, ((0, 0), (radius, radius), (radius, radius), (0, 0)))
    th = H
    if H > 64:
        cand = 64
        while cand >= 8:
            if H % cand == 0:
                th = cand
                break
            cand -= 8
    cv = pl.pallas_call(
        functools.partial(_cost_volume_kernel, radius=radius, th=th,
                          c_true=C, leaky_slope=leaky_slope),
        out_shape=jax.ShapeDtypeStruct((B, D, H, W), jnp.float32),
        grid=(B, H // th),
        in_specs=[
            pl.BlockSpec((1, th, W, C), lambda b, t: (b, t, 0, 0)),
            pl.BlockSpec((1, H + 2 * radius, W + 2 * radius, C),
                         lambda b, t: (b, 0, 0, 0)),
        ],
        out_specs=pl.BlockSpec((1, D, th, W), lambda b, t: (b, 0, t, 0)),
        compiler_params=pltpu.CompilerParams(
            dimension_semantics=("parallel", "parallel"),
            vmem_limit_bytes=32 * 1024 * 1024),
    )(x1, x2p)
    # channels-last (NHWC) for the concat with x1 / flow.
    return cv.transpose(0, 2, 3, 1)


# ----------------------------------------------------------------------------
# JAX glue: warping, bilinear upsampling (NHWC)
# ----------------------------------------------------------------------------
def bilinear_warp(x, flow):
    # TODO(synk): grid_sample-style data-dependent gather kept in plain JAX
    # (vectorized over batch with vmap; a Pallas DMA-gather is overkill here).
    B, H, W, C = x.shape
    ys, xs = jnp.meshgrid(jnp.arange(H, dtype=jnp.float32),
                          jnp.arange(W, dtype=jnp.float32), indexing="ij")
    gx = xs[None] + flow[..., 0]
    gy = ys[None] + flow[..., 1]
    x0 = jnp.floor(gx)
    y0 = jnp.floor(gy)
    wx1 = gx - x0
    wx0 = 1.0 - wx1
    wy1 = gy - y0
    wy0 = 1.0 - wy1
    x_flat = x.reshape(B, H * W, C)

    def tap(iy, ix):
        valid = (ix >= 0) & (ix <= W - 1) & (iy >= 0) & (iy <= H - 1)
        ixc = jnp.clip(ix, 0, W - 1).astype(jnp.int32)
        iyc = jnp.clip(iy, 0, H - 1).astype(jnp.int32)
        idx = iyc * W + ixc                                   # (B, H, W)
        g = jax.vmap(lambda f, i: jnp.take(f, i, axis=0))(x_flat, idx)
        return g * valid[..., None].astype(x.dtype)

    v00 = tap(y0, x0)
    v01 = tap(y0, x0 + 1)
    v10 = tap(y0 + 1, x0)
    v11 = tap(y0 + 1, x0 + 1)
    return ((wy0 * wx0)[..., None] * v00 + (wy0 * wx1)[..., None] * v01 +
            (wy1 * wx0)[..., None] * v10 + (wy1 * wx1)[..., None] * v11)


def upsample2d(x, factor):
    # TODO(synk): F.upsample(mode='bilinear') reproduced with jax.image.resize
    # (half-pixel / align_corners=False convention).
    B, H, W, C = x.shape
    return jax.image.resize(x, (B, H * factor, W * factor, C), method="bilinear")


# ----------------------------------------------------------------------------
# args + parameter construction (deterministic, PyTorch-style init)
# ----------------------------------------------------------------------------
class Args:
    lv_chs = [3, 8, 16]          # input channels + per-level pyramid channels
    num_levels = 3
    output_level = 1
    search_range = 2             # -> 25-channel cost volume
    corr = "CostVolumeLayer"
    corr_activation = True
    residual = True
    input_norm = True
    rgb_max = 255.0
    batch_norm = False


def _xavier_uniform(key, shape):
    fan_in = shape[1] * shape[2] * shape[3]
    fan_out = shape[0] * shape[2] * shape[3]
    limit = math.sqrt(6.0 / (fan_in + fan_out))
    return jax.random.uniform(key, shape, jnp.float32, -limit, limit)


def _prep_conv(w_oihw, b):
    """OIHW weight -> per-tap (T, Cp, Op) bf16 matrices, K/N padded to 128."""
    O, C, KH, KW = w_oihw.shape
    Cp = _rup(C, 128)
    Op = _rup(O, 128)
    wt = w_oihw.transpose(2, 3, 1, 0).reshape(KH * KW, C, O)
    wt = jnp.pad(wt, ((0, 0), (0, Cp - C), (0, Op - O))).astype(jnp.bfloat16)
    bp = jnp.pad(b, (0, Op - O)).astype(jnp.float32).reshape(1, Op)
    return {"w": wt, "b": bp, "cin": C, "cout": O}


def init_params(args, key):
    keys = iter(jax.random.split(key, 1024))

    def conv_p(c_in, c_out, k=3):
        w = _xavier_uniform(next(keys), (c_out, c_in, k, k))
        b = jax.random.uniform(next(keys), (c_out,), jnp.float32, 0.0, 1.0)
        return _prep_conv(w, b)

    params = {}
    # FeaturePyramidExtractor: per level (conv stride2 + conv stride1)
    params["pyramid"] = [(conv_p(ci, co), conv_p(co, co))
                         for ci, co in zip(args.lv_chs[:-1], args.lv_chs[1:])]
    # OpticalFlowEstimator / ContextNetwork, one per level (coarse -> fine)
    corr_ch = (2 * args.search_range + 1) ** 2
    est_chain = [128, 128, 96, 64, 32]
    ctx_chain = [(128, 1), (128, 2), (128, 4), (96, 8), (64, 16), (32, 1)]
    params["estimators"] = []
    params["contexts"] = []
    for ch in args.lv_chs[::-1]:
        prev = ch + corr_ch + 2
        est = []
        for c in est_chain:
            est.append(conv_p(prev, c))
            prev = c
        est.append(conv_p(prev, 2))
        params["estimators"].append(est)
        prev = ch + 2
        ctx = []
        for c, d in ctx_chain:
            ctx.append((conv_p(prev, c), d))
            prev = c
        ctx.append((conv_p(prev, 2), 1))
        params["contexts"].append(ctx)
    return params


# ----------------------------------------------------------------------------
# forward pass (NHWC internally; module boundary stays PyTorch-shaped)
# ----------------------------------------------------------------------------
def feature_pyramid_extractor(params, x):
    feats = []
    for cA, cB in params:
        x = conv2d(x, cA, stride=2, padding=1, leaky_slope=0.1)
        x = conv2d(x, cB, stride=1, padding=1, leaky_slope=0.1)
        feats.append(x)
    return feats[::-1]          # coarse -> fine


def optical_flow_estimator(params, x):
    for i, p in enumerate(params):
        slope = 0.1 if i < len(params) - 1 else None
        x = conv2d(x, p, stride=1, padding=1, leaky_slope=slope)
    return x


def context_network(params, x):
    for i, (p, d) in enumerate(params):
        slope = 0.1 if i < len(params) - 1 else None
        x = conv2d(x, p, stride=1, padding=d, dilation=d, leaky_slope=slope)
    return x


def net_forward(args, params, x):
    if args.input_norm:
        B, C3 = x.shape[0], x.shape[1]
        rgb_mean = x.reshape(B, C3, -1).mean(axis=-1).reshape(B, C3, 1, 1, 1)
        x = (x - rgb_mean) / args.rgb_max

    # one-time layout change to NHWC for the whole network
    x1_raw = jnp.transpose(x[:, :, 0], (0, 2, 3, 1))
    x2_raw = jnp.transpose(x[:, :, 1], (0, 2, 3, 1))
    x1_pyramid = feature_pyramid_extractor(params["pyramid"], x1_raw) + [x1_raw]
    x2_pyramid = feature_pyramid_extractor(params["pyramid"], x2_raw) + [x2_raw]

    flows = []
    summaries = {"x2_warps": []}
    corr_slope = 0.01 if args.corr_activation else None   # F.leaky_relu_ default
    flow = None
    for l, (x1, x2) in enumerate(zip(x1_pyramid, x2_pyramid)):
        if l == 0:
            B, H, W, _ = x1.shape
            flow = jnp.zeros((B, H, W, 2), jnp.float32)
        else:
            flow = upsample2d(flow, 2) * 2.0
        x2_warp = bilinear_warp(x2, flow)
        corr = cost_volume(x1, x2_warp, args.search_range, corr_slope)
        flow_coarse = optical_flow_estimator(
            params["estimators"][l], jnp.concatenate([x1, corr, flow], axis=-1))
        if args.residual:
            flow_coarse = flow_coarse + flow
        flow_fine = context_network(
            params["contexts"][l], jnp.concatenate([x1, flow], axis=-1))
        flow = flow_coarse + flow_fine
        if l == args.output_level:
            factor = 2 ** (args.num_levels - args.output_level - 1)
            flow = upsample2d(flow, factor) * float(factor)
            flows.append(jnp.transpose(flow, (0, 3, 1, 2)))   # NCHW at boundary
            summaries["x2_warps"].append(x2_warp)
            break
        flows.append(jnp.transpose(flow, (0, 3, 1, 2)))
        summaries["x2_warps"].append(x2_warp)
    return flows, summaries


# ----------------------------------------------------------------------------
if __name__ == "__main__":
    args = Args()
    key = jax.random.PRNGKey(0)
    pkey, xkey = jax.random.split(key)
    params = init_params(args, pkey)

    B, H, W = 1, 16, 16
    x = jax.random.uniform(xkey, (B, 3, 2, H, W), jnp.float32, 0.0, 255.0)

    flows, summaries = net_forward(args, params, x)
    final_flow = jax.block_until_ready(flows[-1])
    assert final_flow.shape == (B, 2, H, W), final_flow.shape
    assert bool(jnp.all(jnp.isfinite(final_flow)))
    print("KERNEL_OK")
</pallas_src>

<mosaic_0001>
module attributes {stable_mosaic.version = 11 : i64} {
  func.func @_conv_tap_kernel(%arg0: i32, %arg1: i32, %arg2: memref<1x4x9x9x128xbf16, #tpu.memory_space<vmem>>, %arg3: memref<9x128x128xbf16, #tpu.memory_space<vmem>>, %arg4: memref<1x128xf32, #tpu.memory_space<vmem>>, %arg5: memref<1x8x8x128xf32, #tpu.memory_space<vmem>>) attributes {dimension_semantics = [#tpu.dimension_semantics<parallel>, #tpu.dimension_semantics<parallel>], iteration_bounds = array<i64: 1, 1>, scalar_prefetch = 0 : i64, scratch_operands = 0 : i64, tpu.core_type = #tpu.core_type<tc>, window_params = [{transform_indices = @transform_0, window_bounds = array<i64: 1, 4, 9, 9, 128>}, {pipeline_mode = #tpu.pipeline_mode<synchronous>, transform_indices = @transform_1, window_bounds = array<i64: 9, 128, 128>}, {pipeline_mode = #tpu.pipeline_mode<synchronous>, transform_indices = @transform_2, window_bounds = array<i64: 1, 128>}, {transform_indices = @transform_3, window_bounds = array<i64: 1, 8, 8, 128>}]} {
    %c8_i32 = arith.constant 8 : i32
    %0 = arith.muli %arg1, %c8_i32 : i32
    %cst = arith.constant 0.000000e+00 : f32
    %1 = vector.broadcast %cst : f32 to vector<64x128xf32>
    %c0_i32 = arith.constant 0 : i32
    %2 = arith.addi %0, %c0_i32 : i32
    %c0 = arith.constant 0 : index
    %c0_0 = arith.constant 0 : index
    %3 = arith.index_cast %2 : i32 to index
    %c0_1 = arith.constant 0 : index
    %c0_2 = arith.constant 0 : index
    %4 = vector.load %arg2[%c0, %c0_0, %3, %c0_1, %c0_2] : memref<1x4x9x9x128xbf16, #tpu.memory_space<vmem>>, vector<1x1x8x8x128xbf16>
    %5 = vector.shape_cast %4 : vector<1x1x8x8x128xbf16> to vector<8x8x128xbf16>
    %6 = vector.shape_cast %5 : vector<8x8x128xbf16> to vector<64x128xbf16>
    %c0_3 = arith.constant 0 : index
    %c0_4 = arith.constant 0 : index
    %c0_5 = arith.constant 0 : index
    %7 = vector.load %arg3[%c0_3, %c0_4, %c0_5] : memref<9x128x128xbf16, #tpu.memory_space<vmem>>, vector<1x128x128xbf16>
    %8 = vector.shape_cast %7 : vector<1x128x128xbf16> to vector<128x128xbf16>
    %cst_6 = arith.constant dense<0.000000e+00> : vector<64x128xf32>
    %9 = tpu.matmul %6, %8, %cst_6 {dimension_numbers = #tpu.dot_dimension_numbers<[1], [0], [0], [1], [0, 0, 1, 1], [], []>} : vector<64x128xbf16>, vector<128x128xbf16>, vector<64x128xf32> -> vector<64x128xf32>
    %10 = arith.addf %1, %9 : vector<64x128xf32>
    %c0_i32_7 = arith.constant 0 : i32
    %11 = arith.addi %0, %c0_i32_7 : i32
    %c0_8 = arith.constant 0 : index
    %c1 = arith.constant 1 : index
    %12 = arith.index_cast %11 : i32 to index
    %c0_9 = arith.constant 0 : index
    %c0_10 = arith.constant 0 : index
    %13 = vector.load %arg2[%c0_8, %c1, %12, %c0_9, %c0_10] : memref<1x4x9x9x128xbf16, #tpu.memory_space<vmem>>, vector<1x1x8x8x128xbf16>
    %14 = vector.shape_cast %13 : vector<1x1x8x8x128xbf16> to vector<8x8x128xbf16>
    %15 = vector.shape_cast %14 : vector<8x8x128xbf16> to vector<64x128xbf16>
    %c1_11 = arith.constant 1 : index
    %c0_12 = arith.constant 0 : index
    %c0_13 = arith.constant 0 : index
    %16 = vector.load %arg3[%c1_11, %c0_12, %c0_13] : memref<9x128x128xbf16, #tpu.memory_space<vmem>>, vector<1x128x128xbf16>
    %17 = vector.shape_cast %16 : vector<1x128x128xbf16> to vector<128x128xbf16>
    %cst_14 = arith.constant dense<0.000000e+00> : vector<64x128xf32>
    %18 = tpu.matmul %15, %17, %cst_14 {dimension_numbers = #tpu.dot_dimension_numbers<[1], [0], [0], [1], [0, 0, 1, 1], [], []>} : vector<64x128xbf16>, vector<128x128xbf16>, vector<64x128xf32> -> vector<64x128xf32>
    %19 = arith.addf %10, %18 : vector<64x128xf32>
    %c0_i32_15 = arith.constant 0 : i32
    %20 = arith.addi %0, %c0_i32_15 : i32
    %c0_16 = arith.constant 0 : index
    %c0_17 = arith.constant 0 : index
    %21 = arith.index_cast %20 : i32 to index
    %c1_18 = arith.constant 1 : index
    %c0_19 = arith.constant 0 : index
    %22 = vector.load %arg2[%c0_16, %c0_17, %21, %c1_18, %c0_19] : memref<1x4x9x9x128xbf16, #tpu.memory_space<vmem>>, vector<1x1x8x8x128xbf16>
    %23 = vector.shape_cast %22 : vector<1x1x8x8x128xbf16> to vector<8x8x128xbf16>
    %24 = vector.shape_cast %23 : vector<8x8x128xbf16> to vector<64x128xbf16>
    %c2 = arith.constant 2 : index
    %c0_20 = arith.constant 0 : index
    %c0_21 = arith.constant 0 : index
    %25 = vector.load %arg3[%c2, %c0_20, %c0_21] : memref<9x128x128xbf16, #tpu.memory_space<vmem>>, vector<1x128x128xbf16>
    %26 = vector.shape_cast %25 : vector<1x128x128xbf16> to vector<128x128xbf16>
    %cst_22 = arith.constant dense<0.000000e+00> : vector<64x128xf32>
    %27 = tpu.matmul %24, %26, %cst_22 {dimension_numbers = #tpu.dot_dimension_numbers<[1], [0], [0], [1], [0, 0, 1, 1], [], []>} : vector<64x128xbf16>, vector<128x128xbf16>, vector<64x128xf32> -> vector<64x128xf32>
    %28 = arith.addf %19, %27 : vector<64x128xf32>
    %c0_i32_23 = arith.constant 0 : i32
    %29 = arith.addi %0, %c0_i32_23 : i32
    %c0_24 = arith.constant 0 : index
    %c2_25 = arith.constant 2 : index
    %30 = arith.index_cast %29 : i32 to index
    %c0_26 = arith.constant 0 : index
    %c0_27 = arith.constant 0 : index
    %31 = vector.load %arg2[%c0_24, %c2_25, %30, %c0_26, %c0_27] : memref<1x4x9x9x128xbf16, #tpu.memory_space<vmem>>, vector<1x1x8x8x128xbf16>
    %32 = vector.shape_cast %31 : vector<1x1x8x8x128xbf16> to vector<8x8x128xbf16>
    %33 = vector.shape_cast %32 : vector<8x8x128xbf16> to vector<64x128xbf16>
    %c3 = arith.constant 3 : index
    %c0_28 = arith.constant 0 : index
    %c0_29 = arith.constant 0 : index
    %34 = vector.load %arg3[%c3, %c0_28, %c0_29] : memref<9x128x128xbf16, #tpu.memory_space<vmem>>, vector<1x128x128xbf16>
    %35 = vector.shape_cast %34 : vector<1x128x128xbf16> to vector<128x128xbf16>
    %cst_30 = arith.constant dense<0.000000e+00> : vector<64x128xf32>
    %36 = tpu.matmul %33, %35, %cst_30 {dimension_numbers = #tpu.dot_dimension_numbers<[1], [0], [0], [1], [0, 0, 1, 1], [], []>} : vector<64x128xbf16>, vector<128x128xbf16>, vector<64x128xf32> -> vector<64x128xf32>
    %37 = arith.addf %28, %36 : vector<64x128xf32>
    %c0_i32_31 = arith.constant 0 : i32
    %38 = arith.addi %0, %c0_i32_31 : i32
    %c0_32 = arith.constant 0 : index
    %c3_33 = arith.constant 3 : index
    %39 = arith.index_cast %38 : i32 to index
    %c0_34 = arith.constant 0 : index
    %c0_35 = arith.constant 0 : index
    %40 = vector.load %arg2[%c0_32, %c3_33, %39, %c0_34, %c0_35] : memref<1x4x9x9x128xbf16, #tpu.memory_space<vmem>>, vector<1x1x8x8x128xbf16>
    %41 = vector.shape_cast %40 : vector<1x1x8x8x128xbf16> to vector<8x8x128xbf16>
    %42 = vector.shape_cast %41 : vector<8x8x128xbf16> to vector<64x128xbf16>
    %c4 = arith.constant 4 : index
    %c0_36 = arith.constant 0 : index
    %c0_37 = arith.constant 0 : index
    %43 = vector.load %arg3[%c4, %c0_36, %c0_37] : memref<9x128x128xbf16, #tpu.memory_space<vmem>>, vector<1x128x128xbf16>
    %44 = vector.shape_cast %43 : vector<1x128x128xbf16> to vector<128x128xbf16>
    %cst_38 = arith.constant dense<0.000000e+00> : vector<64x128xf32>
    %45 = tpu.matmul %42, %44, %cst_38 {dimension_numbers = #tpu.dot_dimension_numbers<[1], [0], [0], [1], [0, 0, 1, 1], [], []>} : vector<64x128xbf16>, vector<128x128xbf16>, vector<64x128xf32> -> vector<64x128xf32>
    %46 = arith.addf %37, %45 : vector<64x128xf32>
    %c0_i32_39 = arith.constant 0 : i32
    %47 = arith.addi %0, %c0_i32_39 : i32
    %c0_40 = arith.constant 0 : index
    %c2_41 = arith.constant 2 : index
    %48 = arith.index_cast %47 : i32 to index
    %c1_42 = arith.constant 1 : index
    %c0_43 = arith.constant 0 : index
    %49 = vector.load %arg2[%c0_40, %c2_41, %48, %c1_42, %c0_43] : memref<1x4x9x9x128xbf16, #tpu.memory_space<vmem>>, vector<1x1x8x8x128xbf16>
    %50 = vector.shape_cast %49 : vector<1x1x8x8x128xbf16> to vector<8x8x128xbf16>
    %51 = vector.shape_cast %50 : vector<8x8x128xbf16> to vector<64x128xbf16>
    %c5 = arith.constant 5 : index
    %c0_44 = arith.constant 0 : index
    %c0_45 = arith.constant 0 : index
    %52 = vector.load %arg3[%c5, %c0_44, %c0_45] : memref<9x128x128xbf16, #tpu.memory_space<vmem>>, vector<1x128x128xbf16>
    %53 = vector.shape_cast %52 : vector<1x128x128xbf16> to vector<128x128xbf16>
    %cst_46 = arith.constant dense<0.000000e+00> : vector<64x128xf32>
    %54 = tpu.matmul %51, %53, %cst_46 {dimension_numbers = #tpu.dot_dimension_numbers<[1], [0], [0], [1], [0, 0, 1, 1], [], []>} : vector<64x128xbf16>, vector<128x128xbf16>, vector<64x128xf32> -> vector<64x128xf32>
    %55 = arith.addf %46, %54 : vector<64x128xf32>
    %c1_i32 = arith.constant 1 : i32
    %56 = arith.addi %0, %c1_i32 : i32
    %c0_47 = arith.constant 0 : index
    %c0_48 = arith.constant 0 : index
    %57 = arith.index_cast %56 : i32 to index
    %c0_49 = arith.constant 0 : index
    %c0_50 = arith.constant 0 : index
    %58 = vector.load %arg2[%c0_47, %c0_48, %57, %c0_49, %c0_50] : memref<1x4x9x9x128xbf16, #tpu.memory_space<vmem>>, vector<1x1x8x8x128xbf16>
    %59 = vector.shape_cast %58 : vector<1x1x8x8x128xbf16> to vector<8x8x128xbf16>
    %60 = vector.shape_cast %59 : vector<8x8x128xbf16> to vector<64x128xbf16>
    %c6 = arith.constant 6 : index
    %c0_51 = arith.constant 0 : index
    %c0_52 = arith.constant 0 : index
    %61 = vector.load %arg3[%c6, %c0_51, %c0_52] : memref<9x128x128xbf16, #tpu.memory_space<vmem>>, vector<1x128x128xbf16>
    %62 = vector.shape_cast %61 : vector<1x128x128xbf16> to vector<128x128xbf16>
    %cst_53 = arith.constant dense<0.000000e+00> : vector<64x128xf32>
    %63 = tpu.matmul %60, %62, %cst_53 {dimension_numbers = #tpu.dot_dimension_numbers<[1], [0], [0], [1], [0, 0, 1, 1], [], []>} : vector<64x128xbf16>, vector<128x128xbf16>, vector<64x128xf32> -> vector<64x128xf32>
    %64 = arith.addf %55, %63 : vector<64x128xf32>
    %c1_i32_54 = arith.constant 1 : i32
    %65 = arith.addi %0, %c1_i32_54 : i32
    %c0_55 = arith.constant 0 : index
    %c1_56 = arith.constant 1 : index
    %66 = arith.index_cast %65 : i32 to index
    %c0_57 = arith.constant 0 : index
    %c0_58 = arith.constant 0 : index
    %67 = vector.load %arg2[%c0_55, %c1_56, %66, %c0_57, %c0_58] : memref<1x4x9x9x128xbf16, #tpu.memory_space<vmem>>, vector<1x1x8x8x128xbf16>
    %68 = vector.shape_cast %67 : vector<1x1x8x8x128xbf16> to vector<8x8x128xbf16>
    %69 = vector.shape_cast %68 : vector<8x8x128xbf16> to vector<64x128xbf16>
    %c7 = arith.constant 7 : index
    %c0_59 = arith.constant 0 : index
    %c0_60 = arith.constant 0 : index
    %70 = vector.load %arg3[%c7, %c0_59, %c0_60] : memref<9x128x128xbf16, #tpu.memory_space<vmem>>, vector<1x128x128xbf16>
    %71 = vector.shape_cast %70 : vector<1x128x128xbf16> to vector<128x128xbf16>
    %cst_61 = arith.constant dense<0.000000e+00> : vector<64x128xf32>
    %72 = tpu.matmul %69, %71, %cst_61 {dimension_numbers = #tpu.dot_dimension_numbers<[1], [0], [0], [1], [0, 0, 1, 1], [], []>} : vector<64x128xbf16>, vector<128x128xbf16>, vector<64x128xf32> -> vector<64x128xf32>
    %73 = arith.addf %64, %72 : vector<64x128xf32>
    %c1_i32_62 = arith.constant 1 : i32
    %74 = arith.addi %0, %c1_i32_62 : i32
    %c0_63 = arith.constant 0 : index
    %c0_64 = arith.constant 0 : index
    %75 = arith.index_cast %74 : i32 to index
    %c1_65 = arith.constant 1 : index
    %c0_66 = arith.constant 0 : index
    %76 = vector.load %arg2[%c0_63, %c0_64, %75, %c1_65, %c0_66] : memref<1x4x9x9x128xbf16, #tpu.memory_space<vmem>>, vector<1x1x8x8x128xbf16>
    %77 = vector.shape_cast %76 : vector<1x1x8x8x128xbf16> to vector<8x8x128xbf16>
    %78 = vector.shape_cast %77 : vector<8x8x128xbf16> to vector<64x128xbf16>
    %c8 = arith.constant 8 : index
    %c0_67 = arith.constant 0 : index
    %c0_68 = arith.constant 0 : index
    %79 = vector.load %arg3[%c8, %c0_67, %c0_68] : memref<9x128x128xbf16, #tpu.memory_space<vmem>>, vector<1x128x128xbf16>
    %80 = vector.shape_cast %79 : vector<1x128x128xbf16> to vector<128x128xbf16>
    %cst_69 = arith.constant dense<0.000000e+00> : vector<64x128xf32>
    %81 = tpu.matmul %78, %80, %cst_69 {dimension_numbers = #tpu.dot_dimension_numbers<[1], [0], [0], [1], [0, 0, 1, 1], [], []>} : vector<64x128xbf16>, vector<128x128xbf16>, vector<64x128xf32> -> vector<64x128xf32>
    %82 = arith.addf %73, %81 : vector<64x128xf32>
    %c0_70 = arith.constant 0 : index
    %c0_71 = arith.constant 0 : index
    %83 = vector.load %arg4[%c0_70, %c0_71] : memref<1x128xf32, #tpu.memory_space<vmem>>, vector<1x128xf32>
    %84 = vector.broadcast %83 : vector<1x128xf32> to vector<64x128xf32>
    %85 = arith.addf %82, %84 : vector<64x128xf32>
    %cst_72 = arith.constant 0.000000e+00 : f32
    %86 = vector.broadcast %cst_72 : f32 to vector<64x128xf32>
    %87 = arith.cmpf oge, %85, %86 : vector<64x128xf32>
    %cst_73 = arith.constant 1.000000e-01 : f32
    %88 = vector.broadcast %cst_73 : f32 to vector<64x128xf32>
    %89 = arith.mulf %85, %88 : vector<64x128xf32>
    %90 = arith.select %87, %85, %89 : vector<64x128xi1>, vector<64x128xf32>
    %91 = vector.shape_cast %90 : vector<64x128xf32> to vector<1x8x8x128xf32>
    %c0_74 = arith.constant 0 : index
    %c0_75 = arith.constant 0 : index
    %c0_76 = arith.constant 0 : index
    %c0_77 = arith.constant 0 : index
    %92 = vector.load %arg5[%c0_74, %c0_75, %c0_76, %c0_77] : memref<1x8x8x128xf32, #tpu.memory_space<vmem>>, vector<1x8x8x128xf32>
    tpu.vector_store %arg5[%c0_74, %c0_75, %c0_76, %c0_77], %91 {strides = array<i32>} : memref<1x8x8x128xf32, #tpu.memory_space<vmem>>, vector<1x8x8x128xf32>,
    return
  }
  func.func @transform_0(%arg0: i32, %arg1: i32) -> (i32, i32, i32, i32, i32) {
    %c0_i32 = arith.constant 0 : i32
    %c0_i32_0 = arith.constant 0 : i32
    %c0_i32_1 = arith.constant 0 : i32
    %c0_i32_2 = arith.constant 0 : i32
    %c0_i32_3 = arith.constant 0 : i32
    return %arg0, %c0_i32, %c0_i32_0, %c0_i32_1, %c0_i32_2 : i32, i32, i32, i32, i32
  }
  func.func @transform_1(%arg0: i32, %arg1: i32) -> (i32, i32, i32) {
    %c0_i32 = arith.constant 0 : i32
    %c0_i32_0 = arith.constant 0 : i32
    %c0_i32_1 = arith.constant 0 : i32
    %c0_i32_2 = arith.constant 0 : i32
    return %c0_i32, %c0_i32_0, %c0_i32_1 : i32, i32, i32
  }
  func.func @transform_2(%arg0: i32, %arg1: i32) -> (i32, i32) {
    %c0_i32 = arith.constant 0 : i32
    %c0_i32_0 = arith.constant 0 : i32
    %c0_i32_1 = arith.constant 0 : i32
    return %c0_i32, %c0_i32_0 : i32, i32
  }
  func.func @transform_3(%arg0: i32, %arg1: i32) -> (i32, i32, i32, i32) {
    %c0_i32 = arith.constant 0 : i32
    %c0_i32_0 = arith.constant 0 : i32
    %c0_i32_1 = arith.constant 0 : i32
    return %arg0, %arg1, %c0_i32, %c0_i32_0 : i32, i32, i32, i32
  }
}

</mosaic_0001>

<bundles_post_ra>
// kernel: tpu_custom_call.1
= control target key start
LH: loop header
LB: loop body
LE: loop exit
PB: predicated region body
PF: predicated region fallthrough
CT: control target
= control target key end

     0   :  { %8 = vsyncpa [#allocation3], 0  ;;  %s3028_s0 = inlined_call_operand.vmem [shape: bf16[1,4,9,9,128], index: 0, kind: input, shape index: {}]   ;;  %s3029_s1 = inlined_call_operand.hbm [shape: bf16[9,128,128], index: 1, kind: input, shape index: {}]   ;;  %s3030_s2 = inlined_call_operand.vmem [shape: f32[1,128], index: 2, kind: input, shape index: {}]   ;;  %s3031_s3 = inlined_call_operand.hbm [shape: f32[1,8,8,128], index: 3, kind: output, shape index: {}]  }
   0x1   :  { %9 = vsyncpa [#allocation4], 0  ;;  %s2706_s12 = smov [#allocation2]   ;;  %s2658_s16 = scalar_lea.hbm %s3029_s1, 9216 }
   0x2   :  { %s17_s13 = sshll.u32 %s2706_s12, 4  ;;  %p2659_p0 = scmp.ne.s32.totalorder %s3029_s1, %s2658_s16  ;;  %s18_s13 = int_to_ptr.vmem [resolvable:$true] %s17_s13 }
   0x3   :  { %p2662_p1 = scmp.lt.u32.totalorder %s2658_s16, %s3029_s1 }
   0x5   :  { %p2664_p2 = pnand %p2662_p1, %p2659_p0 }
   0x7   :  { %2667 = shalt.err (!%p2664_p2)
}
   0x8   :  { %s2668_s21 = scalar_lea.vmem %s18_s13, 9216  ;;  %p2673_p4 = scmp.lt.s32.totalorder %s18_s13, %s18_s13 }
   0x9   :  { %p2669_p3 = scmp.ne.s32.totalorder %s18_s13, %s2668_s21  ;;  %p2674_p5 = scmp.lt.s32.totalorder %s2668_s21, %s2668_s21 }
   0xb   :  { %p2675_p6 = por %p2674_p5, %p2673_p4 }
   0xd   :  { %p2676_p7 = pnand %p2675_p6, %p2669_p3 }
   0xf   :  { %2679 = shalt.err (!%p2676_p7)
}
  0x10   :  { %s2707_s22 = smov 64   ;;  %s2708_s23 = smov 4  }
  0x11   :  { %23 = dma.hbm_to_vmem [thread:$0]  %s3029_s1, 9216, %s18_s13, [#allocation3], %s2707_s22, %s2707_s22, %s2708_s23  }
  0x12   :  { %2702 = dma.done.wait [#allocation3], 9216  }
  0x13   :  { %2703 = vsyncadd [#allocation3], 4294958080  ;;  %v2562_v0 = vld [vmem:[#allocation2 + $0x40] sm:$0xff]   ;;  %v2564_v2 = vld [vmem:[#allocation2 + $0x48] sm:$0xff]   ;;  %vm376_vm0 = vsmask.f32 3328 }
  0x14   :  { %v2563_v1 = vld [vmem:[#allocation2 + $0x100] sm:$0xff]   ;;  %2260 = vmatprep.subr.bf16.mxu1 %v2562_v0  ;;  %v2565_v3 = vld [vmem:[#allocation2 + $0x108] sm:$0xff]   ;;  %v2566_v4 = vld [vmem:[#allocation2 + $0x50] sm:$0xff]   ;;  %vm377_vm1 = vsmask.f32 7440 }
  0x15   :  { %2356 = vmatprep.subr.bf16.mxu0 %v2563_v1  ;;  %2261 = vmatpush3.bf16.msra.mxu1 %v2562_v0  ;;  %v2567_v5 = vld [vmem:[#allocation2 + $0x110] sm:$0xff]   ;;  %v2568_v6 = vld [vmem:[#allocation2 + $0x58] sm:$0xff]   ;;  %v2570_v8 = vld [vmem:[#allocation2 + $0x60] sm:$0xff]  }
  0x16   :  { %2357 = vmatpush3.bf16.msra.mxu0 %v2563_v1  ;;  %2262 = vmatprep.subr.bf16.mxu1 %v2564_v2  ;;  %v2569_v7 = vld [vmem:[#allocation2 + $0x118] sm:$0xff]   ;;  %v2571_v9 = vld [vmem:[#allocation2 + $0x120] sm:$0xff]   ;;  %v2572_v10 = vld [vmem:[#allocation2 + $0x68] sm:$0xff]  }
  0x17   :  { %2358 = vmatprep.subr.bf16.mxu0 %v2565_v3  ;;  %v2578_v11 = vld [vmem:[%s3028_s0 + $0x48] ss:$8 sps:$4 sm:$0xff]   ;;  %v2580_v13 = vld [vmem:[%s3028_s0 + $0xd8] ss:$8 sps:$4 sm:$0xff]   ;;  %v2056_v35 = vld [vmem:[%s3028_s0 + $0x94] sm:$0x1] }
  0x18   :  { %v2573_v12 = vld [vmem:[#allocation2 + $0x128] sm:$0xff]   ;;  %2276 = vmatprep.mubr.bf16.mxu1 %v2578_v11  ;;  %v2574_v14 = vld [vmem:[#allocation2 + $0x70] sm:$0xff]   ;;  %2372 = vmatprep.mubr.bf16.mxu0 %v2580_v13  ;;  %v2576_v16 = vld [vmem:[#allocation2 + $0x78] sm:$0xff]   ;;  %v1017_v40 = vshll.u32 %v2056_v35, 16 }
  0x19   :  { %2263 = vmatpush3.bf16.msra.mxu1 %v2564_v2  ;;  %v2575_v15 = vld [vmem:[#allocation2 + $0x130] sm:$0xff]   ;;  %v2577_v17 = vld [vmem:[#allocation2 + $0x138] sm:$0xff]   ;;  %v2579_v18 = vld [vmem:[#allocation2] sm:$0xff]  }
  0x1a   :  { %2359 = vmatpush3.bf16.msra.mxu0 %v2565_v3  ;;  %2264 = vmatprep.subr.bf16.mxu1 %v2566_v4  ;;  %v2581_v19 = vld [vmem:[#allocation2 + $0x140] sm:$0xff]   ;;  %v2583_v21 = vld [vmem:[%s3028_s0 + $0xe8] ss:$8 sps:$4 sm:$0xff]   ;;  %v2588_v28 = vld [vmem:[#allocation2 + $0x18] sm:$0xff]   ;;  %v1019_v51 = vrot.slane %v1017_v40, 5 }
  0x1b   :  { %2360 = vmatprep.subr.bf16.mxu0 %v2567_v5  ;;  %v2582_v20 = vld [vmem:[%s3028_s0 + $0x58] ss:$8 sps:$4 sm:$0xff]   ;;  %v2584_v22 = vld [vmem:[#allocation2 + $0x8] sm:$0xff]   ;;  %v2586_v26 = vld [vmem:[#allocation2 + $0x10] sm:$0xff]  }
  0x1c   :  { %v2585_v23 = vld [vmem:[#allocation2 + $0x148] sm:$0xff]   ;;  %v2596_v25 = vld [vmem:[%s3028_s0 + $0xf8] ss:$8 sps:$4 sm:$0xff]   ;;  %v2587_v27 = vld [vmem:[#allocation2 + $0x150] sm:$0xff]  }
  0x1d   :  { %2265 = vmatpush3.bf16.msra.mxu1 %v2566_v4  ;;  %v2594_v24 = vld [vmem:[%s3028_s0 + $0x68] ss:$8 sps:$4 sm:$0xff]   ;;  %v2598_v29 = vld [vmem:[%s3028_s0 + $0x78] ss:$8 sps:$4 sm:$0xff]   ;;  %v2058_v37 = vld [vmem:[%s3028_s0 + $0x9c] sm:$0x1] }
  0x1e   :  { %2361 = vmatpush3.bf16.msra.mxu0 %v2567_v5  ;;  %2266 = vmatprep.subr.bf16.mxu1 %v2568_v6  ;;  %v2599_v30 = vld [vmem:[%s3028_s0 + $0x108] ss:$8 sps:$4 sm:$0xff]   ;;  %v2589_v31 = vld [vmem:[#allocation2 + $0x158] sm:$0xff]   ;;  %v2590_v33 = vld [vmem:[#allocation2 + $0x20] sm:$0xff]   ;;  %v1031_v43 = vshll.u32 %v2058_v37, 16 }
  0x1f   :  { %2362 = vmatprep.subr.bf16.mxu0 %v2569_v7  ;;  %v2602_v32 = vld [vmem:[%s3028_s0] ss:$8 sps:$4 sm:$0xff]   ;;  %v2055_v34 = vld [vmem:[%s3028_s0 + $0x90] sm:$0xf]  ;;  %v2057_v36 = vld [vmem:[%s3028_s0 + $0x98] sm:$0xf] }
  0x20   :  { %v1008_v38 = vshrl.u32 %v2055_v34, 16  ;;  %v1011_v39 = vshll.u32 %v2055_v34, 16  ;;  %v1022_v41 = vshrl.u32 %v2057_v36, 16  ;;  %v1025_v42 = vshll.u32 %v2057_v36, 16  ;;  %v2591_v44 = vld [vmem:[#allocation2 + $0x160] sm:$0xff]   ;;  %v2592_v48 = vld [vmem:[#allocation2 + $0x28] sm:$0xff]   ;;  %vm2790_vm2 = vmor %vm376_vm0, %vm377_vm1 }
  0x21   :  { %2267 = vmatpush3.bf16.msra.mxu1 %v2568_v6  ;;  %v1033_v52 = vrot.slane %v1031_v43, 5  ;;  %v2059_v53 = vld [vmem:[%s3028_s0 + $0xa0] sm:$0xf]  ;;  %v2060_v54 = vld [vmem:[%s3028_s0 + $0xa4] sm:$0x1]  ;;  %v2593_v61 = vld [vmem:[#allocation2 + $0x168] sm:$0xff]  }
  0x22   :  { %2363 = vmatpush3.bf16.msra.mxu0 %v2569_v7  ;;  %2268 = vmatprep.subr.bf16.mxu1 %v2570_v8  ;;  %v1010_v45 = vrot.slane %v1008_v38, 4  ;;  %v1013_v46 = vrot.slane %v1011_v39, 5  ;;  %v1024_v47 = vrot.slane %v1022_v41, 4  ;;  %v1027_v49 = vrot.slane %v1025_v42, 5  ;;  %v2061_v57 = vld [vmem:[%s3028_s0 + $0xa8] sm:$0xf] }
  0x23   :  { %2364 = vmatprep.subr.bf16.mxu0 %v2571_v9  ;;  %v2062_v58 = vld [vmem:[%s3028_s0 + $0xac] sm:$0x1]  ;;  %v1036_v59 = vshrl.u32 %v2059_v53, 16  ;;  %v1039_v60 = vshll.u32 %v2059_v53, 16  ;;  %v1050_v63 = vshrl.u32 %v2061_v57, 16  ;;  %v1053_v0 = vshll.u32 %v2061_v57, 16 }
  0x24   :  { %v1014_v50 = vor.u32 %v1013_v46, %v1010_v45  ;;  %v1028_v56 = vor.u32 %v1027_v49, %v1024_v47  ;;  %v1045_v4 = vshll.u32 %v2060_v54, 16  ;;  %v2595_v5 = vld [vmem:[#allocation2 + $0x30] sm:$0xff]   ;;  %v2616_v39 = vld [vmem:[%s3028_s0 + $0x20] ss:$8 sps:$4 sm:$0xff]   ;;  %v2070_v54 = vld [vmem:[%s3028_s0 + $0xcc] sm:$0x1] }
  0x25   :  { %2269 = vmatpush3.bf16.msra.mxu1 %v2570_v8  ;;  %v1038_v2 = vrot.slane %v1036_v59, 4  ;;  %v1041_v3 = vrot.slane %v1039_v60, 5  ;;  %v1052_v7 = vrot.slane %v1050_v63, 4  ;;  %v1055_v8 = vrot.slane %v1053_v0, 5  ;;  %v2608_v42 = vld [vmem:[#allocation2 + $0x90] sm:$0xff]   ;;  %v2610_v0 = vld [vmem:[#allocation2 + $0x98] sm:$0xff]  }
  0x26   :  { %2365 = vmatpush3.bf16.msra.mxu0 %v2571_v9  ;;  %2270 = vmatprep.subr.bf16.mxu1 %v2572_v10  ;;  %v1015_v62 = vrot.slane %v1014_v50, 4  ;;  %v1029_v1 = vrot.slane %v1028_v56, 4  ;;  %v1059_v9 = vshll.u32 %v2062_v58, 16  ;;  %v2609_v45 = vld [vmem:[#allocation2 + $0x190] sm:$0xff]   ;;  %v2067_v49 = vld [vmem:[%s3028_s0 + $0xc0] sm:$0xf] }
  0x27   :  { %2366 = vmatprep.subr.bf16.mxu0 %v2573_v12  ;;  %v2069_v53 = vld [vmem:[%s3028_s0 + $0xc8] sm:$0xf]  ;;  %v1092_v57 = vshrl.u32 %v2067_v49, 16  ;;  %v1095_v58 = vshll.u32 %v2067_v49, 16  ;;  %v1115_v63 = vshll.u32 %v2070_v54, 16  ;;  %v2617_v54 = vld [vmem:[#allocation2 + $0xb0] sm:$0xff]  }
  0x28   :  { %v1020_v6 = vsel %vm2790_vm2, %v1015_v62, %v1019_v51  ;;  %v1034_v11 = vsel %vm2790_vm2, %v1029_v1, %v1033_v52  ;;  %v2619_v51 = vld [vmem:[%s3028_s0 + $0x30] ss:$8 sps:$4 sm:$0xff]   ;;  %v2068_v52 = vld [vmem:[%s3028_s0 + $0xc4] sm:$0x1]  ;;  %v1109_v62 = vshll.u32 %v2069_v53, 16 }
  0x29   :  { %2271 = vmatpush3.bf16.msra.mxu1 %v2572_v10  ;;  %v2597_v10 = vld [vmem:[#allocation2 + $0x170] sm:$0xff]   ;;  %v2071_v13 = vcombine.low %v1020_v6, %v1034_v11  ;;  %v1101_v59 = vshll.u32 %v2068_v52, 16 }
  0x2a   :  { %2367 = vmatpush3.bf16.msra.mxu0 %v2573_v12  ;;  %2272 = vmatprep.subr.bf16.mxu1 %v2574_v14  ;;  %v1042_v12 = vor.u32 %v1041_v3, %v1038_v2  ;;  %v1094_v2 = vrot.slane %v1092_v57, 4  ;;  %v1097_v3 = vrot.slane %v1095_v58, 5 }
  0x2b   :  { %2368 = vmatprep.subr.bf16.mxu0 %v2575_v15 }
  0x2c   :  { %v1098_v11 = vor.u32 %v1097_v3, %v1094_v2 }
  0x2d   :  { %2273 = vmatpush3.bf16.msra.mxu1 %v2574_v14  ;;  %v1056_v14 = vor.u32 %v1055_v8, %v1052_v7  ;;  %v1111_v8 = vrot.slane %v1109_v62, 5 }
  0x2e   :  { %2369 = vmatpush3.bf16.msra.mxu0 %v2575_v15  ;;  %2274 = vmatprep.subr.bf16.mxu1 %v2576_v16  ;;  %v2600_v15 = vld [vmem:[#allocation2 + $0x38] sm:$0xff]  }
  0x2f   :  { %2370 = vmatprep.subr.bf16.mxu0 %v2577_v17 }
  0x31   :  { %2275 = vmatpush3.bf16.msra.mxu1 %v2576_v16  ;;  %v1047_v16 = vrot.slane %v1045_v4, 5  ;;  %v1103_v4 = vrot.slane %v1101_v59, 5 }
  0x32   :  { %2371 = vmatpush3.bf16.msra.mxu0 %v2577_v17  ;;  %2284 = vmatprep.subr.bf16.mxu1 %v2579_v18  ;;  %v1061_v17 = vrot.slane %v1059_v9, 5  ;;  %v1117_v9 = vrot.slane %v1115_v63, 5 }
  0x33   :  { %2380 = vmatprep.subr.bf16.mxu0 %v2581_v19 }
  0x34   :  { %2277 = vmatmul.mubr.bf16.vlgmr.msra.gmra.mrb[0].mxu1 %v2582_v20  ;;  %v2601_v20 = vld [vmem:[#allocation2 + $0x178] sm:$0xff]  }
  0x35   :  { %2285 = vmatpush3.bf16.msra.mxu1 %v2579_v18  ;;  %2373 = vmatmul.mubr.bf16.vlgmr.msra.gmra.mrb[0].mxu0 %v2583_v21  ;;  %v1043_v18 = vrot.slane %v1042_v12, 4  ;;  %v2603_v21 = vld [vmem:[#allocation2 + $0x80] sm:$0xff]  }
  0x36   :  { %2381 = vmatpush3.bf16.msra.mxu0 %v2581_v19  ;;  %2286 = vmatprep.subr.bf16.mxu1 %v2584_v22  ;;  %v1057_v19 = vrot.slane %v1056_v14, 4  ;;  %v360_v12 = vld [vmem:[%s3028_s0] sm:$0xf]  ;;  %v362_v14 = vld [vmem:[%s3028_s0 + $0x8] sm:$0xf] }
  0x37   :  { %2382 = vmatprep.subr.bf16.mxu0 %v2585_v23  ;;  %2280 = vmatprep.mubr.bf16.mxu1 %v2594_v24  ;;  %v2604_v24 = vld [vmem:[#allocation2 + $0x180] sm:$0xff]  }
  0x38   :  { %2376 = vmatprep.mubr.bf16.mxu0 %v2596_v25  ;;  %v2605_v25 = vld [vmem:[%s3028_s0 + $0x10] ss:$8 sps:$4 sm:$0xff]  }
  0x39   :  { %2287 = vmatpush3.bf16.msra.mxu1 %v2584_v22  ;;  %v1048_v22 = vsel %vm2790_vm2, %v1043_v18, %v1047_v16  ;;  %v380_v18 = vshrl.u32 %v360_v12, 16 }
  0x3a   :  { %2383 = vmatpush3.bf16.msra.mxu0 %v2585_v23  ;;  %2288 = vmatprep.subr.bf16.mxu1 %v2586_v26  ;;  %v1062_v23 = vsel %vm2790_vm2, %v1057_v19, %v1061_v17  ;;  %v363_v17 = vld [vmem:[%s3028_s0 + $0xc] sm:$0x1]  ;;  %v383_v19 = vshll.u32 %v360_v12, 16  ;;  %v368_v12 = vld [vmem:[%s3028_s0 + $0x20] sm:$0xf] }
  0x3b   :  { %2384 = vmatprep.subr.bf16.mxu0 %v2587_v27 }
  0x3c   :  { %2281 = vmatmul.mubr.bf16.gmra.mrb[4].mxu1 %v2598_v29  ;;  %v2072_v29 = vcombine.low %v1048_v22, %v1062_v23  ;;  %v394_v22 = vshrl.u32 %v362_v14, 16  ;;  %v397_v23 = vshll.u32 %v362_v14, 16 }
  0x3d   :  { %2289 = vmatpush3.bf16.msra.mxu1 %v2586_v26  ;;  %2377 = vmatmul.mubr.bf16.gmra.mrb[4].mxu0 %v2599_v30  ;;  %v2606_v26 = vld [vmem:[#allocation2 + $0x88] sm:$0xff]  }
  0x3e   :  { %2385 = vmatpush3.bf16.msra.mxu0 %v2587_v27  ;;  %2290 = vmatprep.subr.bf16.mxu1 %v2588_v28  ;;  %v2063_v27 = vld [vmem:[%s3028_s0 + $0xb0] sm:$0xf]  ;;  %v2607_v30 = vld [vmem:[#allocation2 + $0x188] sm:$0xff]  }
  0x3f   :  { %2386 = vmatprep.subr.bf16.mxu0 %v2589_v31  ;;  %2300 = vmatprep.mubr.bf16.mxu1 %v2602_v32  ;;  %v2066_v32 = vld [vmem:[%s3028_s0 + $0xbc] sm:$0x1]  ;;  %v1067_v34 = vshll.u32 %v2063_v27, 16 }
  0x40   :  { %2396 = vmatprep.mubr.bf16.mxu0 %v2071_v13  ;;  %v1087_v38 = vshll.u32 %v2066_v32, 16  ;;  %v361_v13 = vld [vmem:[%s3028_s0 + $0x4] sm:$0x1]  ;;  %v399_v32 = vrot.slane %v397_v23, 5 }
  0x41   :  { %2291 = vmatpush3.bf16.msra.mxu1 %v2588_v28  ;;  %v2064_v28 = vld [vmem:[%s3028_s0 + $0xb4] sm:$0x1]  ;;  %v1069_v41 = vrot.slane %v1067_v34, 5  ;;  %v2614_v34 = vld [vmem:[#allocation2 + $0xa8] sm:$0xff]  }
  0x42   :  { %2387 = vmatpush3.bf16.msra.mxu0 %v2589_v31  ;;  %2292 = vmatprep.subr.bf16.mxu1 %v2590_v33  ;;  %v2065_v31 = vld [vmem:[%s3028_s0 + $0xb8] sm:$0xf]  ;;  %v1073_v35 = vshll.u32 %v2064_v28, 16 }
  0x43   :  { %2388 = vmatprep.subr.bf16.mxu0 %v2591_v44  ;;  %v1078_v36 = vshrl.u32 %v2065_v31, 16  ;;  %v1081_v37 = vshll.u32 %v2065_v31, 16  ;;  %v396_v31 = vrot.slane %v394_v22, 4 }
  0x44   :  { %v1075_v47 = vrot.slane %v1073_v35, 5 }
  0x45   :  { %2293 = vmatpush3.bf16.msra.mxu1 %v2590_v33  ;;  %v1064_v33 = vshrl.u32 %v2063_v27, 16  ;;  %v1080_v43 = vrot.slane %v1078_v36, 4  ;;  %v385_v27 = vrot.slane %v383_v19, 5  ;;  %v439_v19 = vshll.u32 %v368_v12, 16 }
  0x46   :  { %2389 = vmatpush3.bf16.msra.mxu0 %v2591_v44  ;;  %2294 = vmatprep.subr.bf16.mxu1 %v2592_v48  ;;  %v1083_v44 = vrot.slane %v1081_v37, 5  ;;  %v2623_v37 = vld [vmem:[%s3028_s0 + $0x8] ss:$8 sps:$4 sm:$0xff]  }
  0x47   :  { %2390 = vmatprep.subr.bf16.mxu0 %v2593_v61  ;;  %v1066_v40 = vrot.slane %v1064_v33, 4 }
  0x48   :  { %v1084_v50 = vor.u32 %v1083_v44, %v1080_v43  ;;  %v366_v44 = vld [vmem:[%s3028_s0 + $0x18] sm:$0xf] }
  0x49   :  { %2295 = vmatpush3.bf16.msra.mxu1 %v2592_v48  ;;  %v1070_v46 = vor.u32 %v1069_v41, %v1066_v40  ;;  %v1089_v48 = vrot.slane %v1087_v38, 5  ;;  %v2615_v38 = vld [vmem:[#allocation2 + $0x1a8] sm:$0xff]   ;;  %v400_v40 = vor.u32 %v399_v32, %v396_v31  ;;  %v364_v41 = vld [vmem:[%s3028_s0 + $0x10] sm:$0xf] }
  0x4a   :  { %2391 = vmatpush3.bf16.msra.mxu0 %v2593_v61  ;;  %2296 = vmatprep.subr.bf16.mxu1 %v2595_v5  ;;  %v1085_v60 = vrot.slane %v1084_v50, 4  ;;  %v1106_v61 = vshrl.u32 %v2069_v53, 16  ;;  %v422_v50 = vshrl.u32 %v366_v44, 16  ;;  %v425_v53 = vshll.u32 %v366_v44, 16  ;;  %v372_v32 = vld [vmem:[%s3028_s0 + $0x30] sm:$0xf] }
  0x4b   :  { %2392 = vmatprep.subr.bf16.mxu0 %v2597_v10  ;;  %v1071_v56 = vrot.slane %v1070_v46, 4  ;;  %v408_v46 = vshrl.u32 %v364_v41, 16 }
  0x4c   :  { %v1090_v6 = vsel %vm2790_vm2, %v1085_v60, %v1089_v48  ;;  %v1108_v7 = vrot.slane %v1106_v61, 4  ;;  %v411_v48 = vshll.u32 %v364_v41, 16  ;;  %v424_v59 = vrot.slane %v422_v50, 4 }
  0x4d   :  { %2297 = vmatpush3.bf16.msra.mxu1 %v2595_v5  ;;  %v1076_v1 = vsel %vm2790_vm2, %v1071_v56, %v1075_v47  ;;  %v2611_v5 = vld [vmem:[#allocation2 + $0x198] sm:$0xff]   ;;  %v401_v47 = vrot.slane %v400_v40, 4  ;;  %v410_v52 = vrot.slane %v408_v46, 4  ;;  %v2618_v56 = vld [vmem:[#allocation2 + $0x1b0] sm:$0xff]   ;;  %v427_v63 = vrot.slane %v425_v53, 5 }
  0x4e   :  { %2393 = vmatpush3.bf16.msra.mxu0 %v2597_v10  ;;  %2298 = vmatprep.subr.bf16.mxu1 %v2600_v15  ;;  %v2073_v10 = vcombine.low %v1076_v1, %v1090_v6  ;;  %v1112_v16 = vor.u32 %v1111_v8, %v1108_v7  ;;  %v413_v58 = vrot.slane %v411_v48, 5  ;;  %v2621_v6 = vld [vmem:[#allocation2 + $0x1b8] sm:$0xff]   ;;  %v2622_v7 = vld [vmem:[#allocation2 + $0xc0] sm:$0xff]   ;;  %v467_v40 = vshll.u32 %v372_v32, 16  ;;  %v2629_v46 = vld [vmem:[#allocation2 + $0x1d0] sm:$0xff]  }
  0x4f   :  { %2394 = vmatprep.subr.bf16.mxu0 %v2601_v20  ;;  %v428_v1 = vor.u32 %v427_v63, %v424_v59 }
  0x51   :  { %2299 = vmatpush3.bf16.msra.mxu1 %v2600_v15  ;;  %v2612_v15 = vld [vmem:[#allocation2 + $0xa0] sm:$0xff]  }
  0x52   :  { %2395 = vmatpush3.bf16.msra.mxu0 %v2601_v20  ;;  %2308 = vmatprep.subr.bf16.mxu1 %v2603_v21  ;;  %v389_v20 = vshll.u32 %v361_v13, 16  ;;  %v369_v13 = vld [vmem:[%s3028_s0 + $0x24] sm:$0x1] }
  0x53   :  { %2404 = vmatprep.subr.bf16.mxu0 %v2604_v24 }
  0x54   :  { %2301 = vmatmul.mubr.bf16.vlgmr.msra.gmra.mrb[0].mxu1 %v2605_v25  ;;  %v1113_v25 = vrot.slane %v1112_v16, 4  ;;  %v391_v28 = vrot.slane %v389_v20, 5  ;;  %v370_v16 = vld [vmem:[%s3028_s0 + $0x28] sm:$0xf] }
  0x55   :  { %2309 = vmatpush3.bf16.msra.mxu1 %v2603_v21  ;;  %2397 = vmatmul.mubr.bf16.vlgmr.msra.gmra.mrb[0].mxu0 %v2072_v29  ;;  %v1099_v21 = vrot.slane %v1098_v11, 4  ;;  %v2613_v29 = vld [vmem:[#allocation2 + $0x1a0] sm:$0xff]   ;;  %v2627_v20 = vld [vmem:[#allocation2 + $0x1c8] sm:$0xff]   ;;  %v450_v22 = vshrl.u32 %v370_v16, 16  ;;  %v453_v23 = vshll.u32 %v370_v16, 16 }
  0x56   :  { %2405 = vmatpush3.bf16.msra.mxu0 %v2604_v24  ;;  %2310 = vmatprep.subr.bf16.mxu1 %v2606_v26  ;;  %v403_v24 = vshll.u32 %v363_v17, 16  ;;  %v1118_v35 = vsel %vm2790_vm2, %v1113_v25, %v1117_v9  ;;  %v2625_v11 = vld [vmem:[%s3028_s0 + $0x18] ss:$8 sps:$4 sm:$0xff]   ;;  %v371_v17 = vld [vmem:[%s3028_s0 + $0x2c] sm:$0x1] }
  0x57   :  { %2406 = vmatprep.subr.bf16.mxu0 %v2607_v30  ;;  %2304 = vmatprep.mubr.bf16.mxu1 %v2616_v39  ;;  %v2125_v16 = vld [vmem:[%s3028_s0 + $0x10] sm:$0xf] }
  0x58   :  { %2400 = vmatprep.mubr.bf16.mxu0 %v2073_v10  ;;  %v405_v33 = vrot.slane %v403_v24, 5  ;;  %v2624_v10 = vld [vmem:[#allocation2 + $0x1c0] sm:$0xff]   ;;  %v459_v24 = vshll.u32 %v371_v17, 16  ;;  %v2126_v17 = vld [vmem:[%s3028_s0 + $0x14] sm:$0x1] }
  0x59   :  { %2311 = vmatpush3.bf16.msra.mxu1 %v2606_v26  ;;  %v382_v26 = vrot.slane %v380_v18, 4  ;;  %v436_v18 = vshrl.u32 %v368_v12, 16  ;;  %v2640_v12 = vld [vmem:[#allocation2 + $0xf8] sm:$0xff]  }
  0x5a   :  { %2407 = vmatpush3.bf16.msra.mxu0 %v2607_v30  ;;  %2312 = vmatprep.subr.bf16.mxu1 %v2608_v42  ;;  %v1104_v30 = vsel %vm2790_vm2, %v1099_v21, %v1103_v4  ;;  %v406_v57 = vsel %vm2790_vm2, %v401_v47, %v405_v33  ;;  %v2620_v4 = vld [vmem:[#allocation2 + $0xb8] sm:$0xff]   ;;  %v445_v21 = vshll.u32 %v369_v13, 16  ;;  %v461_v31 = vrot.slane %v459_v24, 5  ;;  %v2131_v24 = vld [vmem:[%s3028_s0 + $0x28] sm:$0xf] }
  0x5b   :  { %2408 = vmatprep.subr.bf16.mxu0 %v2609_v45  ;;  %v386_v36 = vor.u32 %v385_v27, %v382_v26  ;;  %v2074_v39 = vcombine.low %v1104_v30, %v1118_v35  ;;  %v438_v25 = vrot.slane %v436_v18, 4  ;;  %v441_v26 = vrot.slane %v439_v19, 5  ;;  %v2636_v27 = vld [vmem:[%s3028_s0 + $0x28] ss:$8 sps:$4 sm:$0xff]   ;;  %v374_v35 = vld [vmem:[%s3028_s0 + $0x38] sm:$0xf] }
  0x5c   :  { %2305 = vmatmul.mubr.bf16.gmra.mrb[4].mxu1 %v2619_v51  ;;  %v455_v30 = vrot.slane %v453_v23, 5  ;;  %v481_v44 = vshll.u32 %v374_v35, 16  ;;  %v2641_v13 = vld [vmem:[#allocation2 + $0x1f8] sm:$0xff]   ;;  %v1654_v23 = vshll.u32 %v2125_v16, 16 }
  0x5d   :  { %2313 = vmatpush3.bf16.msra.mxu1 %v2608_v42  ;;  %v365_v42 = vld [vmem:[%s3028_s0 + $0x14] sm:$0x1]  ;;  %v387_v43 = vrot.slane %v386_v36, 4  ;;  %2401 = vmatmul.mubr.bf16.gmra.mrb[4].mxu0 %v2074_v39  ;;  %v442_v33 = vor.u32 %v441_v26, %v438_v25  ;;  %v375_v36 = vld [vmem:[%s3028_s0 + $0x3c] sm:$0x1]  ;;  %v464_v39 = vshrl.u32 %v372_v32, 16 }
  0x5e   :  { %2409 = vmatpush3.bf16.msra.mxu0 %v2609_v45  ;;  %2314 = vmatprep.subr.bf16.mxu1 %v2610_v0  ;;  %v367_v45 = vld [vmem:[%s3028_s0 + $0x1c] sm:$0x1]  ;;  %v417_v49 = vshll.u32 %v365_v42, 16  ;;  %v483_v53 = vrot.slane %v481_v44, 5  ;;  %v2132_v25 = vld [vmem:[%s3028_s0 + $0x2c] sm:$0x1] }
  0x5f   :  { %2410 = vmatprep.subr.bf16.mxu0 %v2611_v5  ;;  %v392_v51 = vsel %vm2790_vm2, %v387_v43, %v391_v28  ;;  %2420 = vmatprep.mubr.bf16.mxu0 %v2623_v37  ;;  %v431_v60 = vshll.u32 %v367_v45, 16  ;;  %v447_v28 = vrot.slane %v445_v21, 5  ;;  %v2628_v37 = vld [vmem:[#allocation2 + $0xd0] sm:$0xff]   ;;  %v443_v42 = vrot.slane %v442_v33, 4  ;;  %v2644_v21 = vld [vmem:[%s3028_s0 + $0xa0] ss:$8 sps:$4 sm:$0xff]  }
  0x60   :  { %v2003_v61 = vcombine.low %v392_v51, %v406_v57  ;;  %v419_v62 = vrot.slane %v417_v49, 5  ;;  %v478_v43 = vshrl.u32 %v374_v35, 16  ;;  %v487_v45 = vshll.u32 %v375_v36, 16  ;;  %v2638_v57 = vld [vmem:[%s3028_s0 + $0x38] ss:$8 sps:$4 sm:$0xff]  }
  0x61   :  { %2315 = vmatpush3.bf16.msra.mxu1 %v2610_v0  ;;  %v414_v0 = vor.u32 %v413_v58, %v410_v52  ;;  %v433_v3 = vrot.slane %v431_v60, 5  ;;  %v466_v48 = vrot.slane %v464_v39, 4  ;;  %v469_v49 = vrot.slane %v467_v40, 5  ;;  %v2630_v58 = vld [vmem:[#allocation2 + $0xd8] sm:$0xff]   ;;  %v2134_v33 = vld [vmem:[%s3028_s0 + $0x34] sm:$0x1] }
  0x62   :  { %2411 = vmatpush3.bf16.msra.mxu0 %v2611_v5  ;;  %2316 = vmatprep.subr.bf16.mxu1 %v2612_v15  ;;  %v429_v5 = vrot.slane %v428_v1, 4  ;;  %v448_v50 = vsel %vm2790_vm2, %v443_v42, %v447_v28  ;;  %v480_v52 = vrot.slane %v478_v43, 4  ;;  %v2632_v1 = vld [vmem:[#allocation2 + $0xe0] sm:$0xff]   ;;  %v1660_v32 = vshll.u32 %v2126_v17, 16 }
  0x63   :  { %2412 = vmatprep.subr.bf16.mxu0 %v2613_v29  ;;  %2324 = vmatprep.mubr.bf16.mxu1 %v2003_v61  ;;  %v415_v2 = vrot.slane %v414_v0, 4  ;;  %v489_v61 = vrot.slane %v487_v45, 5  ;;  %v1696_v35 = vshll.u32 %v2131_v24, 16  ;;  %v2645_v36 = vld [vmem:[%s3028_s0 + $0x60] ss:$8 sps:$4 sm:$0xff]   ;;  %v1716_v45 = vshll.u32 %v2134_v33, 16 }
  0x64   :  { %v434_v9 = vsel %vm2790_vm2, %v429_v5, %v433_v3  ;;  %v484_v60 = vor.u32 %v483_v53, %v480_v52  ;;  %v2633_v5 = vld [vmem:[#allocation2 + $0x1e0] sm:$0xff]   ;;  %v1662_v53 = vrot.slane %v1660_v32, 5 }
  0x65   :  { %2317 = vmatpush3.bf16.msra.mxu1 %v2612_v15  ;;  %v420_v8 = vsel %vm2790_vm2, %v415_v2, %v419_v62  ;;  %v2626_v15 = vld [vmem:[#allocation2 + $0xc8] sm:$0xff]   ;;  %v2631_v62 = vld [vmem:[#allocation2 + $0x1d8] sm:$0xff]   ;;  %v1698_v44 = vrot.slane %v1696_v35, 5  ;;  %v2130_v32 = vld [vmem:[%s3028_s0 + $0x24] sm:$0x1] }
  0x66   :  { %2413 = vmatpush3.bf16.msra.mxu0 %v2613_v29  ;;  %2318 = vmatprep.subr.bf16.mxu1 %v2614_v34  ;;  %v2004_v14 = vcombine.low %v420_v8, %v434_v9  ;;  %v452_v29 = vrot.slane %v450_v22, 4  ;;  %v485_v0 = vrot.slane %v484_v60, 4  ;;  %v2634_v8 = vld [vmem:[#allocation2 + $0xe8] sm:$0xff]   ;;  %v2646_v22 = vld [vmem:[#allocation2 + $0x200] sm:$0xff]  }
  0x67   :  { %2414 = vmatprep.subr.bf16.mxu0 %v2615_v38  ;;  %v2635_v9 = vld [vmem:[#allocation2 + $0x1e8] sm:$0xff]  }
  0x68   :  { %v490_v3 = vsel %vm2790_vm2, %v485_v0, %v489_v61 }
  0x69   :  { %2319 = vmatpush3.bf16.msra.mxu1 %v2614_v34  ;;  %v373_v34 = vld [vmem:[%s3028_s0 + $0x34] sm:$0x1] }
  0x6a   :  { %2415 = vmatpush3.bf16.msra.mxu0 %v2615_v38  ;;  %2320 = vmatprep.subr.bf16.mxu1 %v2617_v54  ;;  %v456_v38 = vor.u32 %v455_v30, %v452_v29  ;;  %v473_v41 = vshll.u32 %v373_v34, 16  ;;  %v2133_v30 = vld [vmem:[%s3028_s0 + $0x30] sm:$0xf]  ;;  %v1693_v34 = vshrl.u32 %v2131_v24, 16 }
  0x6b   :  { %2416 = vmatprep.subr.bf16.mxu0 %v2618_v56  ;;  %v1707_v39 = vshrl.u32 %v2133_v30, 16  ;;  %v1710_v40 = vshll.u32 %v2133_v30, 16  ;;  %v2138_v30 = vld [vmem:[%s3028_s0 + $0x44] sm:$0x1] }
  0x6c   :  { %v457_v47 = vrot.slane %v456_v38, 4  ;;  %v475_v51 = vrot.slane %v473_v41, 5  ;;  %v1702_v38 = vshll.u32 %v2132_v25, 16  ;;  %v2647_v41 = vld [vmem:[#allocation2 + $0x208] sm:$0xff]   ;;  %v1695_v43 = vrot.slane %v1693_v34, 4 }
  0x6d   :  { %2321 = vmatpush3.bf16.msra.mxu1 %v2617_v54 }
  0x6e   :  { %2417 = vmatpush3.bf16.msra.mxu0 %v2618_v56  ;;  %2322 = vmatprep.subr.bf16.mxu1 %v2620_v4  ;;  %v462_v54 = vsel %vm2790_vm2, %v457_v47, %v461_v31  ;;  %v470_v56 = vor.u32 %v469_v49, %v466_v48  ;;  %v1656_v31 = vrot.slane %v1654_v23, 5  ;;  %v1709_v48 = vrot.slane %v1707_v39, 4 }
  0x6f   :  { %2418 = vmatprep.subr.bf16.mxu0 %v2621_v6  ;;  %v2005_v59 = vcombine.low %v448_v50, %v462_v54  ;;  %v1712_v49 = vrot.slane %v1710_v40, 5  ;;  %v2649_v50 = vld [vmem:[%s3028_s0 + $0x70] ss:$8 sps:$4 sm:$0xff]   ;;  %v1699_v54 = vor.u32 %v1698_v44, %v1695_v43 }
  0x70   :  { %v471_v63 = vrot.slane %v470_v56, 4  ;;  %v1704_v56 = vrot.slane %v1702_v38, 5 }
  0x71   :  { %2323 = vmatpush3.bf16.msra.mxu1 %v2620_v4  ;;  %v2643_v4 = vld [vmem:[%s3028_s0 + $0x50] ss:$8 sps:$4 sm:$0xff]   ;;  %v1700_v60 = vrot.slane %v1699_v54, 4 }
  0x72   :  { %2419 = vmatpush3.bf16.msra.mxu0 %v2621_v6  ;;  %2332 = vmatprep.subr.bf16.mxu1 %v2622_v7  ;;  %v476_v2 = vsel %vm2790_vm2, %v471_v63, %v475_v51 }
  0x73   :  { %2428 = vmatprep.subr.bf16.mxu0 %v2624_v10  ;;  %v2006_v6 = vcombine.low %v476_v2, %v490_v3  ;;  %v1705_v2 = vsel %vm2790_vm2, %v1700_v60, %v1704_v56 }
  0x74   :  { %2325 = vmatmul.mubr.bf16.vlgmr.msra.gmra.mrb[0].mxu1 %v2004_v14  ;;  %v2123_v14 = vld [vmem:[%s3028_s0 + $0x8] sm:$0xf] }
  0x75   :  { %2333 = vmatpush3.bf16.msra.mxu1 %v2622_v7  ;;  %2421 = vmatmul.mubr.bf16.vlgmr.msra.gmra.mrb[0].mxu0 %v2625_v11  ;;  %v2642_v7 = vld [vmem:[%s3028_s0 + $0x90] ss:$8 sps:$4 sm:$0xff]   ;;  %v1637_v18 = vshrl.u32 %v2123_v14, 16  ;;  %v1640_v19 = vshll.u32 %v2123_v14, 16 }
  0x76   :  { %2429 = vmatpush3.bf16.msra.mxu0 %v2624_v10  ;;  %2334 = vmatprep.subr.bf16.mxu1 %v2626_v15  ;;  %v2637_v10 = vld [vmem:[#allocation2 + $0xf0] sm:$0xff]  }
  0x77   :  { %2430 = vmatprep.subr.bf16.mxu0 %v2627_v20  ;;  %2424 = vmatprep.mubr.bf16.mxu0 %v2636_v27  ;;  %v2639_v11 = vld [vmem:[#allocation2 + $0x1f0] sm:$0xff]   ;;  %v1639_v26 = vrot.slane %v1637_v18, 4  ;;  %v1642_v27 = vrot.slane %v1640_v19, 5 }
  0x78   :  { %2328 = vmatprep.mubr.bf16.mxu1 %v2005_v59  ;;  %v2652_v59 = vld [vmem:[#allocation2 + $0x210] sm:$0xff]  }
  0x79   :  { %2335 = vmatpush3.bf16.msra.mxu1 %v2626_v15  ;;  %v2124_v15 = vld [vmem:[%s3028_s0 + $0xc] sm:$0x1] }
  0x7a   :  { %2431 = vmatpush3.bf16.msra.mxu0 %v2627_v20  ;;  %2336 = vmatprep.subr.bf16.mxu1 %v2628_v37  ;;  %v1651_v20 = vshrl.u32 %v2125_v16, 16  ;;  %v1646_v28 = vshll.u32 %v2124_v15, 16  ;;  %v2654_v15 = vld [vmem:[#allocation2 + $0x220] sm:$0xff]  }
  0x7b   :  { %2432 = vmatprep.subr.bf16.mxu0 %v2629_v46 }
  0x7c   :  { %2329 = vmatmul.mubr.bf16.gmra.mrb[4].mxu1 %v2006_v6  ;;  %v1653_v29 = vrot.slane %v1651_v20, 4  ;;  %v1648_v47 = vrot.slane %v1646_v28, 5  ;;  %v2137_v6 = vld [vmem:[%s3028_s0 + $0x40] sm:$0xf]  ;;  %v2655_v20 = vld [vmem:[#allocation2 + $0x228] sm:$0xff]  }
  0x7d   :  { %2337 = vmatpush3.bf16.msra.mxu1 %v2628_v37  ;;  %2425 = vmatmul.mubr.bf16.gmra.mrb[4].mxu0 %v2638_v57  ;;  %v1643_v37 = vor.u32 %v1642_v27, %v1639_v26  ;;  %v1713_v57 = vor.u32 %v1712_v49, %v1709_v48  ;;  %v1738_v14 = vshll.u32 %v2137_v6, 16 }
  0x7e   :  { %2433 = vmatpush3.bf16.msra.mxu0 %v2629_v46  ;;  %2338 = vmatprep.subr.bf16.mxu1 %v2630_v58  ;;  %v1657_v42 = vor.u32 %v1656_v31, %v1653_v29  ;;  %v2648_v46 = vld [vmem:[%s3028_s0 + $0xb0] ss:$8 sps:$4 sm:$0xff]   ;;  %v2128_v31 = vld [vmem:[%s3028_s0 + $0x1c] sm:$0x1] }
  0x7f   :  { %2434 = vmatprep.subr.bf16.mxu0 %v2631_v62  ;;  %2444 = vmatprep.mubr.bf16.mxu0 %v2643_v4  ;;  %v1644_v51 = vrot.slane %v1643_v37, 4  ;;  %v1714_v61 = vrot.slane %v1713_v57, 4  ;;  %v2653_v4 = vld [vmem:[#allocation2 + $0x218] sm:$0xff]   ;;  %v1740_v25 = vrot.slane %v1738_v14, 5  ;;  %v2656_v37 = vld [vmem:[#allocation2 + $0x230] sm:$0xff]   ;;  %v1674_v39 = vshll.u32 %v2128_v31, 16 }
  0x80   :  { %2348 = vmatprep.mubr.bf16.mxu1 %v2642_v7  ;;  %v1658_v52 = vrot.slane %v1657_v42, 4 }
  0x81   :  { %2339 = vmatpush3.bf16.msra.mxu1 %v2630_v58  ;;  %v1718_v58 = vrot.slane %v1716_v45, 5  ;;  %v1649_v63 = vsel %vm2790_vm2, %v1644_v51, %v1648_v47  ;;  %v1676_v48 = vrot.slane %v1674_v39, 5 }
  0x82   :  { %2435 = vmatpush3.bf16.msra.mxu0 %v2631_v62  ;;  %2340 = vmatprep.subr.bf16.mxu1 %v2632_v1  ;;  %v2650_v62 = vld [vmem:[%s3028_s0 + $0xc0] ss:$8 sps:$4 sm:$0xff]   ;;  %v1663_v0 = vsel %vm2790_vm2, %v1658_v52, %v1662_v53 }
  0x83   :  { %2436 = vmatprep.subr.bf16.mxu0 %v2633_v5  ;;  %v1719_v3 = vsel %vm2790_vm2, %v1714_v61, %v1718_v58  ;;  %v2139_v7 = vcombine.low %v1649_v63, %v1663_v0 }
  0x85   :  { %2341 = vmatpush3.bf16.msra.mxu1 %v2632_v1  ;;  %v2651_v1 = vld [vmem:[%s3028_s0 + $0x80] ss:$8 sps:$4 sm:$0xff]  }
  0x86   :  { %2437 = vmatpush3.bf16.msra.mxu0 %v2633_v5  ;;  %2342 = vmatprep.subr.bf16.mxu1 %v2634_v8  ;;  %v2135_v5 = vld [vmem:[%s3028_s0 + $0x38] sm:$0xf] }
  0x87   :  { %2438 = vmatprep.subr.bf16.mxu0 %v2635_v9 }
  0x89   :  { %2343 = vmatpush3.bf16.msra.mxu1 %v2634_v8  ;;  %v2127_v8 = vld [vmem:[%s3028_s0 + $0x18] sm:$0xf] }
  0x8a   :  { %2439 = vmatpush3.bf16.msra.mxu0 %v2635_v9  ;;  %2344 = vmatprep.subr.bf16.mxu1 %v2637_v10  ;;  %v2129_v9 = vld [vmem:[%s3028_s0 + $0x20] sm:$0xf]  ;;  %v1665_v16 = vshrl.u32 %v2127_v8, 16  ;;  %v1668_v17 = vshll.u32 %v2127_v8, 16 }
  0x8b   :  { %2440 = vmatprep.subr.bf16.mxu0 %v2639_v11  ;;  %v1679_v18 = vshrl.u32 %v2129_v9, 16  ;;  %v1682_v19 = vshll.u32 %v2129_v9, 16  ;;  %v2151_v9 = vld [vmem:[%s3030_s2] ss:$0 sm:$0xff]  ;;  %s2709_s2 = smov [#allocation5]  }
  0x8c   :  { %v1667_v26 = vrot.slane %v1665_v16, 4  ;;  %v1670_v27 = vrot.slane %v1668_v17, 5  ;;  %s1954_s30 = sshll.u32 %s2709_s2, 4  ;;  %s1955_s30 = int_to_ptr.vmem [resolvable:$true] %s1954_s30 }
  0x8d   :  { %2345 = vmatpush3.bf16.msra.mxu1 %v2637_v10  ;;  %v2141_v10 = vcombine.low %v1705_v2, %v1719_v3  ;;  %v1681_v28 = vrot.slane %v1679_v18, 4  ;;  %v1684_v29 = vrot.slane %v1682_v19, 5  ;;  %s2680_s4 = scalar_lea.vmem %s1955_s30, 1024  ;;  %p2685_p9 = scmp.lt.s32.totalorder %s1955_s30, %s1955_s30 }
  0x8e   :  { %2441 = vmatpush3.bf16.msra.mxu0 %v2639_v11  ;;  %2346 = vmatprep.subr.bf16.mxu1 %v2640_v12  ;;  %v1721_v11 = vshrl.u32 %v2135_v5, 16  ;;  %v1671_v38 = vor.u32 %v1670_v27, %v1667_v26  ;;  %p2681_p8 = scmp.ne.s32.totalorder %s1955_s30, %s2680_s4  ;;  %p2686_p10 = scmp.lt.s32.totalorder %s2680_s4, %s2680_s4 }
  0x8f   :  { %2442 = vmatprep.subr.bf16.mxu0 %v2641_v13  ;;  %v1685_v40 = vor.u32 %v1684_v29, %v1681_v28 }
  0x90   :  { %v1672_v47 = vrot.slane %v1671_v38, 4  ;;  %p2687_p11 = por %p2686_p10, %p2685_p9 }
  0x91   :  { %2347 = vmatpush3.bf16.msra.mxu1 %v2640_v12  ;;  %v1724_v12 = vshll.u32 %v2135_v5, 16  ;;  %v1686_v49 = vrot.slane %v1685_v40, 4 }
  0x92   :  { %2443 = vmatpush3.bf16.msra.mxu0 %v2641_v13  ;;  %2476 = vmatprep.subr.bf16.mxu1 %v2646_v22  ;;  %v1735_v13 = vshrl.u32 %v2137_v6, 16  ;;  %v1677_v53 = vsel %vm2790_vm2, %v1672_v47, %v1676_v48  ;;  %p2688_p12 = pnand %p2687_p11, %p2681_p8 }
  0x93   :  { %2452 = vmatprep.subr.bf16.mxu0 %v2646_v22  ;;  %v1726_v23 = vrot.slane %v1724_v12, 5 }
  0x94   :  { %2349 = vmatmul.mubr.bf16.vlgmr.msra.gmra.mrb[0].mxu1 %v2644_v21  ;;  %v2136_v21 = vld [vmem:[%s3028_s0 + $0x3c] sm:$0x1]  ;;  %v1737_v24 = vrot.slane %v1735_v13, 4 }
  0x95   :  { %2445 = vmatmul.mubr.bf16.vlgmr.msra.gmra.mrb[0].mxu0 %v2645_v36  ;;  %2484 = vmatpush3.bf16.msra.mxu1 %v2646_v22  ;;  %v1730_v34 = vshll.u32 %v2136_v21, 16  ;;  %v1744_v36 = vshll.u32 %v2138_v30, 16 }
  0x96   :  { %2453 = vmatpush3.bf16.msra.mxu0 %v2646_v22  ;;  %2477 = vmatprep.subr.bf16.mxu1 %v2647_v41  ;;  %v1723_v22 = vrot.slane %v1721_v11, 4  ;;  %v1741_v35 = vor.u32 %v1740_v25, %v1737_v24 }
  0x97   :  { %2454 = vmatprep.subr.bf16.mxu0 %v2647_v41  ;;  %2352 = vmatprep.mubr.bf16.mxu1 %v2648_v46  ;;  %v1732_v43 = vrot.slane %v1730_v34, 5  ;;  %v1746_v45 = vrot.slane %v1744_v36, 5  ;;  %v2657_v46 = vld [vmem:[#allocation2 + $0x238] sm:$0xff]  }
  0x98   :  { %2448 = vmatprep.mubr.bf16.mxu0 %v2649_v50  ;;  %v1727_v33 = vor.u32 %v1726_v23, %v1723_v22  ;;  %v1742_v44 = vrot.slane %v1741_v35, 4 }
  0x99   :  { %2485 = vmatpush3.bf16.msra.mxu1 %v2647_v41 }
  0x9a   :  { %2455 = vmatpush3.bf16.msra.mxu0 %v2647_v41  ;;  %2478 = vmatprep.subr.bf16.mxu1 %v2652_v59  ;;  %v1688_v41 = vshll.u32 %v2130_v32, 16  ;;  %v1728_v42 = vrot.slane %v1727_v33, 4  ;;  %v1747_v52 = vsel %vm2790_vm2, %v1742_v44, %v1746_v45 }
  0x9b   :  { %2456 = vmatprep.subr.bf16.mxu0 %v2652_v59 }
  0x9c   :  { %2353 = vmatmul.mubr.bf16.gmra.mrb[4].mxu1 %v2650_v62  ;;  %v1690_v50 = vrot.slane %v1688_v41, 5  ;;  %v1733_v51 = vsel %vm2790_vm2, %v1728_v42, %v1732_v43 }
  0x9d   :  { %2449 = vmatmul.mubr.bf16.gmra.mrb[4].mxu0 %v2651_v1  ;;  %2486 = vmatpush3.bf16.msra.mxu1 %v2652_v59  ;;  %v2142_v56 = vcombine.low %v1733_v51, %v1747_v52 }
  0x9e   :  { %2457 = vmatpush3.bf16.msra.mxu0 %v2652_v59  ;;  %2479 = vmatprep.subr.bf16.mxu1 %v2653_v4  ;;  %v1691_v54 = vsel %vm2790_vm2, %v1686_v49, %v1690_v50 }
  0x9f   :  { %2458 = vmatprep.subr.bf16.mxu0 %v2653_v4  ;;  %2468 = vmatprep.mubr.bf16.mxu0 %v2139_v7  ;;  %v2140_v57 = vcombine.low %v1677_v53, %v1691_v54 }
  0xa0   :  { %2472 = vmatprep.mubr.bf16.mxu1 %v2141_v10 }
  0xa1   :  { %2487 = vmatpush3.bf16.msra.mxu1 %v2653_v4 }
  0xa2   :  { %2459 = vmatpush3.bf16.msra.mxu0 %v2653_v4  ;;  %2480 = vmatprep.subr.bf16.mxu1 %v2654_v15 }
  0xa3   :  { %2460 = vmatprep.subr.bf16.mxu0 %v2654_v15 }
  0xa5   :  { %2488 = vmatpush3.bf16.msra.mxu1 %v2654_v15 }
  0xa6   :  { %2461 = vmatpush3.bf16.msra.mxu0 %v2654_v15  ;;  %2481 = vmatprep.subr.bf16.mxu1 %v2655_v20 }
  0xa7   :  { %2462 = vmatprep.subr.bf16.mxu0 %v2655_v20 }
  0xa9   :  { %2489 = vmatpush3.bf16.msra.mxu1 %v2655_v20 }
  0xaa   :  { %2463 = vmatpush3.bf16.msra.mxu0 %v2655_v20  ;;  %2482 = vmatprep.subr.bf16.mxu1 %v2656_v37 }
  0xab   :  { %2464 = vmatprep.subr.bf16.mxu0 %v2656_v37 }
  0xad   :  { %2490 = vmatpush3.bf16.msra.mxu1 %v2656_v37 }
  0xae   :  { %2465 = vmatpush3.bf16.msra.mxu0 %v2656_v37  ;;  %2483 = vmatprep.subr.bf16.mxu1 %v2657_v46 }
  0xaf   :  { %2466 = vmatprep.subr.bf16.mxu0 %v2657_v46 }
  0xb1   :  { %2491 = vmatpush3.bf16.msra.mxu1 %v2657_v46 }
  0xb2   :  { %2467 = vmatpush3.bf16.msra.mxu0 %v2657_v46 }
  0xb4   :  { %2473 = vmatmul.mubr.bf16.vlgmr.msra.gmra.mrb[8].mxu1 %v2142_v56 }
  0xb5   :  { %2469 = vmatmul.mubr.bf16.vlgmr.msra.gmra.mrb[0].mxu0 %v2140_v57 }
 0x167   :  { %v2350_v58 = vpop.f32.mrb[0].mxu1 }
 0x168   :  { %v779_v59 = vpop.f32.mrb[1].mxu1 }
 0x169   :  { %v2351_v60 = vpop.f32.mrb[2].mxu1 }
 0x16a   :  { %v782_v61 = vpop.f32.mrb[3].mxu1 }
 0x16f   :  { %v2354_v62 = vpop.f32.mrb[4].mxu1 }
 0x170   :  { %v2450_v63 = vpop.f32.mrb[4].mxu0  ;;  %v795_v0 = vpop.f32.mrb[5].mxu1 }
 0x171   :  { %v2496_v1 = vadd.f32 %v2450_v63, %v2354_v62  ;;  %v1597_v2 = vpop.f32.mrb[5].mxu0  ;;  %v2355_v3 = vpop.f32.mrb[6].mxu1 }
 0x172   :  { %v2498_v4 = vadd.f32 %v1597_v2, %v795_v0  ;;  %v2451_v55 = vpop.f32.mrb[6].mxu0  ;;  %v798_v5 = vpop.f32.mrb[7].mxu1 }
 0x173   :  { %v2500_v6 = vadd.f32 %v2451_v55, %v2355_v3  ;;  %v1600_v7 = vpop.f32.mrb[7].mxu0 }
 0x174   :  { %v2502_v8 = vadd.f32 %v1600_v7, %v798_v5 }
 0x187   :  { %v2474_v10 = vpop.f32.mrb[8].mxu1 }
 0x188   :  { %v2470_v11 = vpop.f32.mrb[0].mxu0  ;;  %v2497_v12 = vadd.f32 %v2496_v1, %v2474_v10  ;;  %v1879_v13 = vpop.f32.mrb[9].mxu1 }
 0x189   :  { %v2492_v14 = vadd.f32 %v2470_v11, %v2350_v58  ;;  %v1863_v15 = vpop.f32.mrb[1].mxu0  ;;  %v2499_v16 = vadd.f32 %v2498_v4, %v1879_v13  ;;  %v2475_v17 = vpop.f32.mrb[10].mxu1 }
 0x18a   :  { %v1915_v18 = vadd.f32 %v2497_v12, %v2151_v9  ;;  %v2493_v19 = vadd.f32 %v1863_v15, %v779_v59  ;;  %v2471_v20 = vpop.f32.mrb[2].mxu0  ;;  %v2501_v21 = vadd.f32 %v2500_v6, %v2475_v17  ;;  %v1882_v22 = vpop.f32.mrb[11].mxu1 }
 0x18b   :  { %v1911_v23 = vadd.f32 %v2492_v14, %v2151_v9  ;;  %v1913_v24 = vadd.f32 %v2499_v16, %v2151_v9  ;;  %v2494_v25 = vadd.f32 %v2471_v20, %v2351_v60  ;;  %v1866_v26 = vpop.f32.mrb[3].mxu0  ;;  %v2503_v27 = vadd.f32 %v2502_v8, %v1882_v22 }
 0x18c   :  { %vm1923_vm3 = vcmp.ge.f32.partialorder %v1915_v18, 0.0  ;;  %v1931_v28 = vmul.f32 0.1, %v1915_v18  ;;  %v1909_v29 = vadd.f32 %v2493_v19, %v2151_v9  ;;  %v1916_v30 = vadd.f32 %v2501_v21, %v2151_v9 }
 0x18d   :  { %vm1919_vm4 = vcmp.ge.f32.partialorder %v1911_v23, 0.0  ;;  %v1927_v31 = vmul.f32 0.1, %v1911_v23  ;;  %vm1921_vm5 = vcmp.ge.f32.partialorder %v1913_v24, 0.0  ;;  %v1929_v32 = vmul.f32 0.1, %v1913_v24 }
 0x18e   :  { %v1939_v33 = vsel %vm1923_vm3, %v1915_v18, %v1931_v28  ;;  %vm1917_vm6 = vcmp.ge.f32.partialorder %v1909_v29, 0.0  ;;  %v1925_v34 = vmul.f32 0.1, %v1909_v29  ;;  %v1912_v35 = vadd.f32 %v2494_v25, %v2151_v9 }
 0x18f   :  { %v1935_v36 = vsel %vm1919_vm4, %v1911_v23, %v1927_v31  ;;  %1947 = vst [vmem:[#allocation5 + $0x30] sm:$0xff] %v1939_v33  ;;  %v1937_v37 = vsel %vm1921_vm5, %v1913_v24, %v1929_v32  ;;  %vm1924_vm7 = vcmp.ge.f32.partialorder %v1916_v30, 0.0  ;;  %v1932_v38 = vmul.f32 0.1, %v1916_v30 }
 0x190   :  { %1943 = vst [vmem:[#allocation5 + $0x10] sm:$0xff] %v1935_v36  ;;  %v1933_v39 = vsel %vm1917_vm6, %v1909_v29, %v1925_v34  ;;  %1945 = vst [vmem:[#allocation5 + $0x20] sm:$0xff] %v1937_v37  ;;  %vm1920_vm8 = vcmp.ge.f32.partialorder %v1912_v35, 0.0  ;;  %v1928_v40 = vmul.f32 0.1, %v1912_v35  ;;  %v2495_v41 = vadd.f32 %v1866_v26, %v782_v61 }
 0x191   :  { %1941 = vst [vmem:[#allocation5] sm:$0xff] %v1933_v39  ;;  %v1940_v42 = vsel %vm1924_vm7, %v1916_v30, %v1932_v38  ;;  %v1914_v43 = vadd.f32 %v2503_v27, %v2151_v9 }
 0x192   :  { %v1936_v44 = vsel %vm1920_vm8, %v1912_v35, %v1928_v40  ;;  %1948 = vst [vmem:[#allocation5 + $0x38] sm:$0xff] %v1940_v42  ;;  %v1910_v45 = vadd.f32 %v2495_v41, %v2151_v9 }
 0x193   :  { %1944 = vst [vmem:[#allocation5 + $0x18] sm:$0xff] %v1936_v44  ;;  %vm1922_vm9 = vcmp.ge.f32.partialorder %v1914_v43, 0.0  ;;  %v1930_v46 = vmul.f32 0.1, %v1914_v43 }
 0x194   :  { %vm1918_vm10 = vcmp.ge.f32.partialorder %v1910_v45, 0.0  ;;  %v1926_v47 = vmul.f32 0.1, %v1910_v45 }
 0x195   :  { %v1938_v48 = vsel %vm1922_vm9, %v1914_v43, %v1930_v46 }
 0x196   :  { %v1934_v49 = vsel %vm1918_vm10, %v1910_v45, %v1926_v47  ;;  %1946 = vst [vmem:[#allocation5 + $0x28] sm:$0xff] %v1938_v48 }
 0x197   :  { %1942 = vst [vmem:[#allocation5 + $0x8] sm:$0xff] %v1934_v49 }
 0x198   :  { %2691 = shalt.err (!%p2688_p12)
}
 0x199   :  { %s2692_s7 = scalar_lea.hbm %s3031_s3, 1024 }
 0x19a   :  { %p2693_p13 = scmp.ne.s32.totalorder %s3031_s3, %s2692_s7  ;;  %p2696_p0 = scmp.lt.u32.totalorder %s2692_s7, %s3031_s3 }
 0x19c   :  { %p2698_p1 = pnand %p2696_p0, %p2693_p13 }
 0x19e   :  { %2701 = shalt.err (!%p2698_p1)
}
 0x19f   :  { %s2710_s12 = smov 128   ;;  %s2711_s13 = smov 8  }
 0x1a0   :  { %1960 = dma.vmem_to_hbm [thread:$0]  %s1955_s30, 1024, %s3031_s3, [#allocation4], %s2710_s12, %s2710_s12, %s2711_s13  }
 0x1a1   :  { %2704 = dma.done.wait [#allocation4], 1024  }
 0x1a2   :  { %2705 = vsyncadd [#allocation4], 4294966272 }
 0x1a3   :  { %1964 = vsyncpa [#allocation3], 1 }
 0x1a4   :  { %1965 = vsyncpa [#allocation4], 1 }

</bundles_post_ra>
